<compile_context>
chip_gen: v7x
topology: tpu7x:2x2x1
jax: 0.10.0
libtpu: 0.0.40
codegen_flags: <defaults>
</compile_context>

<pallas_src>
import functools

import jax
import jax.numpy as jnp
from jax.experimental import pallas as pl
from jax.experimental.pallas import tpu as pltpu


def _emission_kernel(hi_ref, lo_ref, iota_ref, xt_ref, out_ref):
    # hi_ref, lo_ref : (N, M) bf16, hi/lo split of log_softmax(matrix) (resident)
    # iota_ref       : (M, 1) int32 column iota (resident)
    # xt_ref         : (1, tT) int32 lane-major observation indices
    # out_ref        : (N, tT) f32 lane-dense output tile
    xt = xt_ref[...]                                   # (1, tT)
    row_ids = iota_ref[...]                            # (M, 1)

    # One-hot selector in (M, tT) orientation, built directly in bf16
    # (0/1 exact; native MXU operand dtype; half the vreg footprint of f32).
    onehot = (row_ids == xt).astype(jnp.bfloat16)      # (M, tT)

    dn = (((1,), (0,)), ((), ()))
    # out[n, t] = log_sm[n, x_t[t]] ≈ hi@onehot + lo@onehot, f32 accumulation.
    acc = jax.lax.dot_general(hi_ref[...], onehot, dimension_numbers=dn,
                              preferred_element_type=jnp.float32)
    acc += jax.lax.dot_general(lo_ref[...], onehot, dimension_numbers=dn,
                               preferred_element_type=jnp.float32)
    out_ref[...] = acc


@functools.partial(jax.jit, static_argnames=("tile_t",))
def emission_matrix_forward(matrix: jax.Array, x_t: jax.Array,
                            *, tile_t: int = 4096) -> jax.Array:
    """matrix: (N, M) float, x_t: (T,) int -> (T, N) float32.

    tile_t must be a multiple of 128 (lane width).
    """
    if tile_t % 128 != 0:
        raise ValueError(f"tile_t must be a multiple of 128, got {tile_t}")

    N, M = matrix.shape
    T = x_t.shape[0]

    # log_softmax once in the wrapper; hi/lo bf16 split for a 2-pass exact-ish
    # selection matmul in the kernel.
    log_sm = jax.nn.log_softmax(matrix.astype(jnp.float32), axis=1)   # (N, M)
    log_hi = log_sm.astype(jnp.bfloat16)
    log_lo = (log_sm - log_hi.astype(jnp.float32)).astype(jnp.bfloat16)

    # Tile along T (lane axis). Pick the largest tile <= tile_t, but keep at
    # least 2 grid steps when T allows so v7x's two TensorCores both get work.
    T_lanes = pl.cdiv(T, 128) * 128
    tT = min(tile_t, T_lanes)
    if T_lanes >= 256 and T_lanes // tT < 2:
        tT = pl.cdiv(pl.cdiv(T_lanes, 2), 128) * 128
    T_pad = pl.cdiv(T, tT) * tT
    grid_t = T_pad // tT

    # Lane-major x_t; pad with index 0 (valid; padded columns sliced away).
    xt2 = jnp.pad(x_t.astype(jnp.int32), (0, T_pad - T)).reshape(1, T_pad)
    # Hoisted loop-invariant iota column (resident in VMEM).
    iota_m = jnp.arange(M, dtype=jnp.int32).reshape(M, 1)

    cost = pl.CostEstimate(
        flops=2 * 2 * N * M * T_pad,                       # two bf16 matmuls
        transcendentals=0,                                  # softmax hoisted out
        bytes_accessed=2 * (2 * N * M) + 4 * M + 4 * T_pad + 4 * N * T_pad,
    )

    out_nt = pl.pallas_call(
        _emission_kernel,
        out_shape=jax.ShapeDtypeStruct((N, T_pad), jnp.float32),
        grid=(grid_t,),
        in_specs=[
            pl.BlockSpec((N, M), lambda i: (0, 0)),        # log_sm hi (resident)
            pl.BlockSpec((N, M), lambda i: (0, 0)),        # log_sm lo (resident)
            pl.BlockSpec((M, 1), lambda i: (0, 0)),        # iota column (resident)
            pl.BlockSpec((1, tT), lambda i: (0, i)),       # x_t tile (lane-major)
        ],
        out_specs=pl.BlockSpec((N, tT), lambda i: (0, i)),  # lane-dense output
        compiler_params=pltpu.CompilerParams(
            dimension_semantics=("parallel",),             # shard T across cores (v7x)
            vmem_limit_bytes=32 * 1024 * 1024,             # safe on v5e/v6e/v7x
        ),
        cost_estimate=cost,
    )(log_hi, log_lo, iota_m, xt2)

    # Back to PyTorch layout (T, N). Downstream code that can consume
    # time-major (N, T) should use out_nt directly and skip this transpose.
    return out_nt[:, :T].T


def _reference(matrix, x_t):
    log_sm = jax.nn.log_softmax(matrix.astype(jnp.float32), axis=1)
    return log_sm[:, x_t].T


if __name__ == "__main__":
    key = jax.random.PRNGKey(0)
    k_mat, k_obs, k_obs2 = jax.random.split(key, 3)

    # Small, deterministic setup: N hidden states, M observation symbols.
    N, M, T = 8, 128, 16
    emissions = jax.random.normal(k_mat, (N, M), dtype=jnp.float32)
    x_t = jax.random.randint(k_obs, (T,), 0, M, dtype=jnp.int32)

    out = emission_matrix_forward(emissions, x_t)
    out = jax.block_until_ready(out)
    ref = _reference(emissions, x_t)
    assert out.shape == (T, N)
    assert jnp.allclose(out, ref, atol=1e-5, rtol=1e-5), "mismatch vs reference (T=16)"

    # Second check: T not a multiple of the tile, multi-step grid (exercises
    # padding + the grid_t >= 2 cap).
    T2 = 300
    x_t2 = jax.random.randint(k_obs2, (T2,), 0, M, dtype=jnp.int32)
    out2 = jax.block_until_ready(emission_matrix_forward(emissions, x_t2))
    ref2 = _reference(emissions, x_t2)
    assert out2.shape == (T2, N)
    assert jnp.allclose(out2, ref2, atol=1e-5, rtol=1e-5), "mismatch vs reference (T=300)"

    print("KERNEL_OK")
</pallas_src>

<mosaic_0001>
module attributes {stable_mosaic.version = 11 : i64} {
  func.func @_emission_kernel(%arg0: i32, %arg1: memref<8x128xbf16, #tpu.memory_space<vmem>>, %arg2: memref<8x128xbf16, #tpu.memory_space<vmem>>, %arg3: memref<128x1xi32, #tpu.memory_space<vmem>>, %arg4: memref<1x128xi32, #tpu.memory_space<vmem>>, %arg5: memref<8x128xf32, #tpu.memory_space<vmem>>) attributes {dimension_semantics = [#tpu.dimension_semantics<parallel>], iteration_bounds = array<i64: 1>, scalar_prefetch = 0 : i64, scratch_operands = 0 : i64, tpu.core_type = #tpu.core_type<tc>, window_params = [{pipeline_mode = #tpu.pipeline_mode<synchronous>, transform_indices = @transform_0, window_bounds = array<i64: 8, 128>}, {pipeline_mode = #tpu.pipeline_mode<synchronous>, transform_indices = @transform_1, window_bounds = array<i64: 8, 128>}, {pipeline_mode = #tpu.pipeline_mode<synchronous>, transform_indices = @transform_2, window_bounds = array<i64: 128, 1>}, {transform_indices = @transform_3, window_bounds = array<i64: 1, 128>}, {transform_indices = @transform_4, window_bounds = array<i64: 8, 128>}]} {
    %c0 = arith.constant 0 : index
    %c0_0 = arith.constant 0 : index
    %0 = vector.load %arg4[%c0, %c0_0] : memref<1x128xi32, #tpu.memory_space<vmem>>, vector<1x128xi32>
    %c0_1 = arith.constant 0 : index
    %c0_2 = arith.constant 0 : index
    %1 = vector.load %arg3[%c0_1, %c0_2] : memref<128x1xi32, #tpu.memory_space<vmem>>, vector<128x1xi32>
    %2 = vector.broadcast %1 : vector<128x1xi32> to vector<128x128xi32>
    %3 = vector.broadcast %0 : vector<1x128xi32> to vector<128x128xi32>
    %4 = arith.cmpi eq, %2, %3 : vector<128x128xi32>
    %5 = arith.extui %4 : vector<128x128xi1> to vector<128x128xi32>
    %6 = arith.sitofp %5 : vector<128x128xi32> to vector<128x128xf32>
    %7 = arith.truncf %6 : vector<128x128xf32> to vector<128x128xbf16>
    %c0_3 = arith.constant 0 : index
    %c0_4 = arith.constant 0 : index
    %8 = vector.load %arg1[%c0_3, %c0_4] : memref<8x128xbf16, #tpu.memory_space<vmem>>, vector<8x128xbf16>
    %cst = arith.constant dense<0.000000e+00> : vector<8x128xf32>
    %9 = tpu.matmul %8, %7, %cst {dimension_numbers = #tpu.dot_dimension_numbers<[1], [0], [0], [1], [0, 0, 1, 1], [], []>} : vector<8x128xbf16>, vector<128x128xbf16>, vector<8x128xf32> -> vector<8x128xf32>
    %c0_5 = arith.constant 0 : index
    %c0_6 = arith.constant 0 : index
    %10 = vector.load %arg2[%c0_5, %c0_6] : memref<8x128xbf16, #tpu.memory_space<vmem>>, vector<8x128xbf16>
    %cst_7 = arith.constant dense<0.000000e+00> : vector<8x128xf32>
    %11 = tpu.matmul %10, %7, %cst_7 {dimension_numbers = #tpu.dot_dimension_numbers<[1], [0], [0], [1], [0, 0, 1, 1], [], []>} : vector<8x128xbf16>, vector<128x128xbf16>, vector<8x128xf32> -> vector<8x128xf32>
    %12 = arith.addf %9, %11 : vector<8x128xf32>
    %c0_8 = arith.constant 0 : index
    %c0_9 = arith.constant 0 : index
    %13 = vector.load %arg5[%c0_8, %c0_9] : memref<8x128xf32, #tpu.memory_space<vmem>>, vector<8x128xf32>
    tpu.vector_store %arg5[%c0_8, %c0_9], %12 {strides = array<i32>} : memref<8x128xf32, #tpu.memory_space<vmem>>, vector<8x128xf32>,
    return
  }
  func.func @transform_0(%arg0: i32) -> (i32, i32) {
    %c0_i32 = arith.constant 0 : i32
    %c0_i32_0 = arith.constant 0 : i32
    %c0_i32_1 = arith.constant 0 : i32
    return %c0_i32, %c0_i32_0 : i32, i32
  }
  func.func @transform_1(%arg0: i32) -> (i32, i32) {
    %c0_i32 = arith.constant 0 : i32
    %c0_i32_0 = arith.constant 0 : i32
    %c0_i32_1 = arith.constant 0 : i32
    return %c0_i32, %c0_i32_0 : i32, i32
  }
  func.func @transform_2(%arg0: i32) -> (i32, i32) {
    %c0_i32 = arith.constant 0 : i32
    %c0_i32_0 = arith.constant 0 : i32
    %c0_i32_1 = arith.constant 0 : i32
    return %c0_i32, %c0_i32_0 : i32, i32
  }
  func.func @transform_3(%arg0: i32) -> (i32, i32) {
    %c0_i32 = arith.constant 0 : i32
    %c0_i32_0 = arith.constant 0 : i32
    return %c0_i32, %arg0 : i32, i32
  }
  func.func @transform_4(%arg0: i32) -> (i32, i32) {
    %c0_i32 = arith.constant 0 : i32
    %c0_i32_0 = arith.constant 0 : i32
    return %c0_i32, %arg0 : i32, i32
  }
}

</mosaic_0001>

<bundles_post_ra>
// kernel: emission_matrix_forward.1
= control target key start
LH: loop header
LB: loop body
LE: loop exit
PB: predicated region body
PF: predicated region fallthrough
CT: control target
= control target key end

     0   :  { %v344_v0 = vmov 0   ;;  %v345_v7 = vmov 0.0   ;;  %vm346_vm0 = vmmov 0   ;;  %v347_v23 = vmov 1.0|1.0   ;;  %s485_s2 = inlined_call_operand.vmem [shape: s32[128,1], index: 2, kind: input, shape index: {}]   ;;  %s486_s3 = inlined_call_operand.vmem [shape: s32[1,128], index: 3, kind: input, shape index: {}]   ;;  %s487_s1 = inlined_call_operand.vmem [shape: bf16[8,128], index: 1, kind: input, shape index: {}]   ;;  %s488_s0 = inlined_call_operand.vmem [shape: bf16[8,128], index: 0, kind: input, shape index: {}]   ;;  %s489_s4 = inlined_call_operand.vmem [shape: f32[8,128], index: 4, kind: output, shape index: {}]  }
   0x1   :  { %343 = vset.pattern.permute.xlu1 %v344_v0  ;;  %342 = vset.pattern.permute.xlu0 %v344_v0  ;;  %v21_v1 = vld [vmem:[%s485_s2 + $0x10] sm:$0xff]  ;;  %v19_v2 = vld [vmem:[%s485_s2] sm:$0xff]  ;;  %v22_v3 = vld [vmem:[%s485_s2 + $0x18] sm:$0xff] }
   0x2   :  { %42 = vperm.xlu1 %343, %v21_v1   ;;  %36 = vperm.xlu0 %342, %v19_v2   ;;  %v20_v4 = vld [vmem:[%s485_s2 + $0x8] sm:$0xff]  ;;  %v23_v6 = vld [vmem:[%s485_s2 + $0x20] sm:$0xff]  ;;  %v26_v8 = vld [vmem:[%s485_s2 + $0x38] sm:$0xff] }
   0x3   :  { %v24_v5 = vld [vmem:[%s485_s2 + $0x28] sm:$0xff]  ;;  %297 = vmatprep.subr.bf16.mxu1 %v345_v7  ;;  %317 = vmatprep.subr.bf16.mxu0 %v345_v7  ;;  %v25_v9 = vld [vmem:[%s485_s2 + $0x30] sm:$0xff]  ;;  %v27_v11 = vld [vmem:[%s485_s2 + $0x40] sm:$0xff] }
   0x4   :  { %v28_v10 = vld [vmem:[%s485_s2 + $0x48] sm:$0xff]  ;;  %v30_v12 = vld [vmem:[%s485_s2 + $0x58] sm:$0xff]  ;;  %v29_v13 = vld [vmem:[%s485_s2 + $0x50] sm:$0xff]  ;;  %313 = vmatprep.mubr.msk.bf16.mxu1 %vm346_vm0, %v345_v7  ;;  %333 = vmatprep.mubr.msk.bf16.mxu0 %vm346_vm0, %v345_v7 }
   0x5   :  { %v32_v14 = vld [vmem:[%s485_s2 + $0x68] sm:$0xff]  ;;  %v31_v15 = vld [vmem:[%s485_s2 + $0x60] sm:$0xff]  ;;  %v34_v16 = vld [vmem:[%s485_s2 + $0x78] sm:$0xff] }
   0x6   :  { %45 = vperm.xlu1 %343, %v22_v3   ;;  %39 = vperm.xlu0 %342, %v20_v4   ;;  %v33_v17 = vld [vmem:[%s485_s2 + $0x70] sm:$0xff]  ;;  %v428_v20 = vld [vmem:[%s486_s3] ss:$0 sm:$0xff] }
   0x7   :  { %v144_v36 = vld [vmem:[%s487_s1] sm:$0xf] }
   0x8   :  { %v143_v37 = vld [vmem:[%s488_s0] sm:$0xf] }
   0xa   :  { %51 = vperm.xlu1 %343, %v24_v5   ;;  %48 = vperm.xlu0 %342, %v23_v6  }
   0xe   :  { %57 = vperm.xlu1 %343, %v26_v8   ;;  %54 = vperm.xlu0 %342, %v25_v9  }
  0x12   :  { %63 = vperm.xlu1 %343, %v28_v10   ;;  %60 = vperm.xlu0 %342, %v27_v11  }
  0x16   :  { %69 = vperm.xlu1 %343, %v30_v12   ;;  %66 = vperm.xlu0 %342, %v29_v13  }
  0x1a   :  { %75 = vperm.xlu1 %343, %v32_v14   ;;  %72 = vperm.xlu0 %342, %v31_v15  }
  0x1e   :  { %81 = vperm.xlu1 %343, %v34_v16   ;;  %78 = vperm.xlu0 %342, %v33_v17  }
  0x81   :  { %v43_v18 = vpop.permute.xlu1 %42  ;;  %v37_v19 = vpop.permute.xlu0 %36 }
  0x82   :  { %vm87_vm2 = vcmp.eq.s32.totalorder %v37_v19, %v428_v20  ;;  %vm89_vm4 = vcmp.eq.s32.totalorder %v43_v18, %v428_v20 }
  0x85   :  { %v46_v21 = vpop.permute.xlu1 %45  ;;  %v40_v22 = vpop.permute.xlu0 %39 }
  0x86   :  { %vm88_vm1 = vcmp.eq.s32.totalorder %v40_v22, %v428_v20  ;;  %vm90_vm5 = vcmp.eq.s32.totalorder %v46_v21, %v428_v20 }
  0x87   :  { %vm247_vm3 = vmpackc.low %vm88_vm1, %vm87_vm2 }
  0x88   :  { %298 = vmatpush3.bf16.msk.msra.mxu1 %vm247_vm3, %v347_v23  ;;  %318 = vmatpush3.bf16.msk.msra.mxu0 %vm247_vm3, %v347_v23  ;;  %vm249_vm6 = vmpackc.low %vm90_vm5, %vm89_vm4 }
  0x89   :  { %v52_v24 = vpop.permute.xlu1 %51  ;;  %v49_v25 = vpop.permute.xlu0 %48  ;;  %299 = vmatprep.subr.bf16.mxu1 %v345_v7  ;;  %319 = vmatprep.subr.bf16.mxu0 %v345_v7 }
  0x8a   :  { %vm92_vm7 = vcmp.eq.s32.totalorder %v52_v24, %v428_v20  ;;  %vm91_vm8 = vcmp.eq.s32.totalorder %v49_v25, %v428_v20 }
  0x8b   :  { %vm251_vm9 = vmpackc.low %vm92_vm7, %vm91_vm8 }
  0x8c   :  { %300 = vmatpush3.bf16.msk.msra.mxu1 %vm249_vm6, %v347_v23  ;;  %320 = vmatpush3.bf16.msk.msra.mxu0 %vm249_vm6, %v347_v23 }
  0x8d   :  { %v58_v26 = vpop.permute.xlu1 %57  ;;  %v55_v27 = vpop.permute.xlu0 %54  ;;  %301 = vmatprep.subr.bf16.mxu1 %v345_v7  ;;  %321 = vmatprep.subr.bf16.mxu0 %v345_v7 }
  0x8e   :  { %vm94_vm10 = vcmp.eq.s32.totalorder %v58_v26, %v428_v20  ;;  %vm93_vm11 = vcmp.eq.s32.totalorder %v55_v27, %v428_v20 }
  0x8f   :  { %vm253_vm12 = vmpackc.low %vm94_vm10, %vm93_vm11 }
  0x90   :  { %302 = vmatpush3.bf16.msk.msra.mxu1 %vm251_vm9, %v347_v23  ;;  %322 = vmatpush3.bf16.msk.msra.mxu0 %vm251_vm9, %v347_v23 }
  0x91   :  { %v64_v28 = vpop.permute.xlu1 %63  ;;  %v61_v29 = vpop.permute.xlu0 %60  ;;  %303 = vmatprep.subr.bf16.mxu1 %v345_v7  ;;  %323 = vmatprep.subr.bf16.mxu0 %v345_v7 }
  0x92   :  { %vm96_vm13 = vcmp.eq.s32.totalorder %v64_v28, %v428_v20  ;;  %vm95_vm14 = vcmp.eq.s32.totalorder %v61_v29, %v428_v20 }
  0x93   :  { %vm255_vm15 = vmpackc.low %vm96_vm13, %vm95_vm14 }
  0x94   :  { %304 = vmatpush3.bf16.msk.msra.mxu1 %vm253_vm12, %v347_v23  ;;  %324 = vmatpush3.bf16.msk.msra.mxu0 %vm253_vm12, %v347_v23 }
  0x95   :  { %v70_v30 = vpop.permute.xlu1 %69  ;;  %v67_v31 = vpop.permute.xlu0 %66  ;;  %305 = vmatprep.subr.bf16.mxu1 %v345_v7  ;;  %325 = vmatprep.subr.bf16.mxu0 %v345_v7 }
  0x96   :  { %vm98_vm0 = vcmp.eq.s32.totalorder %v70_v30, %v428_v20  ;;  %vm97_vm1 = vcmp.eq.s32.totalorder %v67_v31, %v428_v20 }
  0x97   :  { %vm257_vm2 = vmpackc.low %vm98_vm0, %vm97_vm1 }
  0x98   :  { %306 = vmatpush3.bf16.msk.msra.mxu1 %vm255_vm15, %v347_v23  ;;  %326 = vmatpush3.bf16.msk.msra.mxu0 %vm255_vm15, %v347_v23 }
  0x99   :  { %v76_v32 = vpop.permute.xlu1 %75  ;;  %v73_v33 = vpop.permute.xlu0 %72  ;;  %307 = vmatprep.subr.bf16.mxu1 %v345_v7  ;;  %327 = vmatprep.subr.bf16.mxu0 %v345_v7 }
  0x9a   :  { %vm100_vm3 = vcmp.eq.s32.totalorder %v76_v32, %v428_v20  ;;  %vm99_vm4 = vcmp.eq.s32.totalorder %v73_v33, %v428_v20 }
  0x9b   :  { %vm259_vm5 = vmpackc.low %vm100_vm3, %vm99_vm4 }
  0x9c   :  { %308 = vmatpush3.bf16.msk.msra.mxu1 %vm257_vm2, %v347_v23  ;;  %328 = vmatpush3.bf16.msk.msra.mxu0 %vm257_vm2, %v347_v23 }
  0x9d   :  { %v82_v34 = vpop.permute.xlu1 %81  ;;  %v79_v35 = vpop.permute.xlu0 %78  ;;  %309 = vmatprep.subr.bf16.mxu1 %v345_v7  ;;  %329 = vmatprep.subr.bf16.mxu0 %v345_v7 }
  0x9e   :  { %vm102_vm6 = vcmp.eq.s32.totalorder %v82_v34, %v428_v20  ;;  %vm101_vm7 = vcmp.eq.s32.totalorder %v79_v35, %v428_v20 }
  0x9f   :  { %vm261_vm8 = vmpackc.low %vm102_vm6, %vm101_vm7 }
  0xa0   :  { %310 = vmatpush3.bf16.msk.msra.mxu1 %vm259_vm5, %v347_v23  ;;  %330 = vmatpush3.bf16.msk.msra.mxu0 %vm259_vm5, %v347_v23 }
  0xa1   :  { %311 = vmatprep.subr.bf16.mxu1 %v345_v7  ;;  %331 = vmatprep.subr.bf16.mxu0 %v345_v7 }
  0xa4   :  { %312 = vmatpush3.bf16.msk.msra.mxu1 %vm261_vm8, %v347_v23  ;;  %332 = vmatpush3.bf16.msk.msra.mxu0 %vm261_vm8, %v347_v23 }
  0xa7   :  { %314 = vmatmul.mubr.bf16.vlgmr.msra.gmra.mrb[0].mxu1 %v144_v36  ;;  %334 = vmatmul.mubr.bf16.vlgmr.msra.gmra.mrb[0].mxu0 %v143_v37 }
 0x17a   :  { %v179_v38 = vpop.f32.mrb[0].mxu1  ;;  %v219_v39 = vpop.f32.mrb[0].mxu0 }
 0x17b   :  { %v220_v40 = vadd.f32 %v219_v39, %v179_v38  ;;  %v315_v41 = vpop.f32.mrb[1].mxu1  ;;  %v335_v42 = vpop.f32.mrb[1].mxu0 }
 0x17c   :  { %v182_v43 = vpop.f32.mrb[2].mxu1  ;;  %v222_v44 = vpop.f32.mrb[2].mxu0 }
 0x17d   :  { %225 = vst [vmem:[%s489_s4] sm:$0xff] %v220_v40  ;;  %v316_v45 = vpop.f32.mrb[3].mxu1  ;;  %v336_v46 = vpop.f32.mrb[3].mxu0 }

</bundles_post_ra>
